<compile_context>
chip_gen: v7x
topology: tpu7x:2x2x1
jax: 0.10.0
libtpu: 0.0.40
codegen_flags: <defaults>
</compile_context>

<pallas_src>
import jax
import jax.numpy as jnp
from jax.experimental import pallas as pl
from jax.experimental.pallas import tpu as pltpu


def _make_gather_kernel(tile_tokens, dma_depth, n_tokens):
    """Builds the per-tile multi-row DMA gather kernel (static params closed over)."""
    TT, K, N = tile_tokens, dma_depth, n_tokens

    def kernel(ids_ref, table_ref, out_ref, sem):
        # ids_ref:   SMEM (N,) int32 scalar-prefetch -- token ids.
        # table_ref: HBM  (V, D_pad)                 -- embedding table (pl.ANY).
        # out_ref:   VMEM (TT, D_pad)                -- output slab for this tile.
        # sem:       DMA semaphores, shape (K,)      -- rolling window of K copies.
        i = pl.program_id(0)
        base = i * TT
        # Number of valid tokens in this tile (handles the ragged last tile).
        count = jnp.minimum(TT, N - base)

        def start_row(j):
            row = ids_ref[base + j]
            pltpu.make_async_copy(
                table_ref.at[pl.ds(row, 1), :],
                out_ref.at[pl.ds(j, 1), :],
                sem.at[j % K],
            ).start()

        def wait_row(j):
            # Shapes only (matches the started copy's size); row index is irrelevant.
            pltpu.make_async_copy(
                table_ref.at[pl.ds(0, 1), :],
                out_ref.at[pl.ds(j, 1), :],
                sem.at[j % K],
            ).wait()

        # Prologue: put up to K row-gather DMAs in flight.
        @pl.loop(0, min(K, TT))
        def _(j):
            @pl.when(j < count)
            def _():
                start_row(j)

        # Steady state: retire row j, then refill the freed slot with row j + K.
        @pl.loop(0, TT)
        def _(j):
            @pl.when(j < count)
            def _():
                wait_row(j)

            @pl.when(j + K < count)
            def _():
                start_row(j + K)

        # Rows [count, TT) of the last tile are never DMA'd (saves traffic);
        # they are sliced off after the kernel, so their contents are unused.

    return kernel


def embedding_lookup(token_ids, table_padded, embed_dim, *,
                     tile_tokens=128, dma_depth=8):
    """token_ids: (B, S) int; table_padded: (V, D_pad) with D_pad % 128 == 0.

    Returns (B, S, embed_dim) in table_padded.dtype.
    """
    B, S = token_ids.shape
    V, D_pad = table_padded.shape
    N = B * S

    # Keep the output slab sublane-aligned.
    tile_tokens = max(8, ((tile_tokens + 7) // 8) * 8)

    # TODO(synk): torch.nn.Embedding raises on out-of-range ids; we clamp so a
    # bad id can never drive an out-of-bounds row DMA (HW fault on TPU).
    ids_flat = jnp.clip(token_ids.reshape(N).astype(jnp.int32), 0, V - 1)

    n_tiles = pl.cdiv(N, tile_tokens)
    N_pad = n_tiles * tile_tokens

    kernel = _make_gather_kernel(tile_tokens, dma_depth, N)

    out = pl.pallas_call(
        kernel,
        out_shape=jax.ShapeDtypeStruct((N_pad, D_pad), table_padded.dtype),
        grid_spec=pltpu.PrefetchScalarGridSpec(
            num_scalar_prefetch=1,
            grid=(n_tiles,),
            in_specs=[
                # Embedding table stays in HBM; rows are gathered by manual DMA.
                pl.BlockSpec(memory_space=pl.ANY),
            ],
            # One lane/sublane-dense output slab per tile, flushed once per tile.
            out_specs=pl.BlockSpec((tile_tokens, D_pad), lambda i, ids: (i, 0)),
            scratch_shapes=[pltpu.SemaphoreType.DMA((dma_depth,))],
        ),
        compiler_params=pltpu.CompilerParams(
            # Tiles are independent -> shard across TensorCores (v7x megacore).
            dimension_semantics=("parallel",),
        ),
    )(ids_flat, table_padded)

    if N_pad != N or D_pad != embed_dim:
        out = out[:N, :embed_dim]
    return out.reshape(B, S, embed_dim)


class BaseModelPallas:
    """JAX/Pallas mirror of BaseModel's parameterized component (the embedding)."""

    def __init__(self, vocab_size, embed_dim, num_class, pad_index,
                 pad_size=1500, word2vec=None, dropout=0.5, **kwargs):
        self.embed_dim = embed_dim
        self.num_class = num_class
        self.pad_size = pad_size
        self.pad_index = pad_index
        self.model_name = "base_model"
        self.T = kwargs.get("T", 400)
        self.seed = kwargs.get("seed", None)

        key = jax.random.PRNGKey(0)
        if word2vec is not None:
            # nn.Embedding.from_pretrained: no padding_idx -> pad row NOT zeroed
            # (matches torch semantics).
            table = jnp.asarray(word2vec, dtype=jnp.float32)
        else:
            # nn.Embedding default init: N(0, 1); padding_idx row zeroed.
            table = jax.random.normal(key, (vocab_size, embed_dim), dtype=jnp.float32)
            table = table.at[pad_index].set(0.0)
        self.embedding_table = table  # unpadded reference copy

        # Hoisted, cached lane-dense table: pad embed dim to a multiple of 128
        # ONCE at init (zero columns are sliced off after the kernel).
        d_pad = ((embed_dim + 127) // 128) * 128
        if d_pad != embed_dim:
            table = jnp.pad(table, ((0, 0), (0, d_pad - embed_dim)))
        self.embedding_table_padded = table

    def embed(self, text):
        return embedding_lookup(text, self.embedding_table_padded, self.embed_dim)

    def forward(self, text, lengths, masks, ids, graph, **kwargs):
        # TODO(synk): the PyTorch base class literally returns the string
        # 'forward'; the encoder/decoder and the training loop live on
        # subclasses / host side. We return the embedding lookup, the only
        # compute owned by this module.
        return self.embed(text)


if __name__ == "__main__":
    # Small, deterministic example shapes: batch=2, seq=8, vocab=32, embed_dim=32.
    B, S, V, D = 2, 8, 32, 32
    pad_index = 0

    key = jax.random.PRNGKey(0)
    k_ids, _ = jax.random.split(key)
    text = jax.random.randint(k_ids, (B, S), minval=0, maxval=V, dtype=jnp.int32)
    # Force a few padding tokens to exercise padding_idx semantics.
    text = text.at[0, -2:].set(pad_index)

    model = BaseModelPallas(vocab_size=V, embed_dim=D, num_class=4, pad_index=pad_index)

    lengths = jnp.array([S - 2, S], dtype=jnp.int32)
    masks = (text != pad_index).astype(jnp.float32)

    out = model.forward(text, lengths, masks, ids=None, graph=None)
    out = jax.block_until_ready(out)

    # Reference check against plain-JAX gather on the unpadded table.
    ref = jnp.take(model.embedding_table, text, axis=0)
    assert out.shape == (B, S, D)
    assert jnp.allclose(out, ref, atol=1e-5), "mismatch vs reference gather"
    assert jnp.allclose(out[0, -1], 0.0), "padding row should be zero"

    print("KERNEL_OK")
</pallas_src>

<mosaic_0001>
module attributes {stable_mosaic.version = 11 : i64} {
  func.func @kernel(%arg0: i32, %arg1: memref<16xi32, #tpu.memory_space<smem>>, %arg2: memref<32x128xf32, #tpu.memory_space<any>>, %arg3: memref<128x128xf32, #tpu.memory_space<vmem>>, %arg4: memref<8x!tpu.dma_semaphore, #tpu.memory_space<semaphore_mem>>) attributes {dimension_semantics = [#tpu.dimension_semantics<parallel>], iteration_bounds = array<i64: 1>, scalar_prefetch = 1 : i64, scratch_operands = 1 : i64, tpu.core_type = #tpu.core_type<tc>, window_params = [{}, {transform_indices = @transform_1, window_bounds = array<i64: 128, 128>}]} {
    %c128_i32 = arith.constant 128 : i32
    %0 = arith.muli %arg0, %c128_i32 : i32
    %c16_i32 = arith.constant 16 : i32
    %1 = arith.subi %c16_i32, %0 : i32
    %c128_i32_0 = arith.constant 128 : i32
    %2 = arith.minsi %c128_i32_0, %1 : i32
    %c0_i32 = arith.constant 0 : i32
    %c8_i32 = arith.constant 8 : i32
    %3 = arith.addi %c0_i32, %c8_i32 : i32
    %c1_i32 = arith.constant 1 : i32
    scf.for %arg5 = %c0_i32 to %3 step %c1_i32  : i32 {
      %c1_i32_6 = arith.constant 1 : i32
      %5 = arith.muli %arg5, %c1_i32_6 : i32
      %c0_i32_7 = arith.constant 0 : i32
      %6 = arith.addi %c0_i32_7, %5 : i32
      %7 = arith.cmpi slt, %6, %2 : i32
      %8 = arith.extui %7 : i1 to i32
      %c0_i32_8 = arith.constant 0 : i32
      %9 = arith.cmpi ne, %8, %c0_i32_8 : i32
      scf.if %9 {
        %10 = arith.addi %0, %6 : i32
        %11 = arith.index_cast %10 : i32 to index
        %12 = memref.load %arg1[%11] : memref<16xi32, #tpu.memory_space<smem>>
        %c8_i32_9 = arith.constant 8 : i32
        %c0_i32_10 = arith.constant 0 : i32
        %13 = arith.cmpi eq, %c8_i32_9, %c0_i32_10 : i32
        %c1_i32_11 = arith.constant 1 : i32
        %14 = arith.select %13, %c1_i32_11, %c8_i32_9 : i32
        %15 = arith.remsi %6, %14 : i32
        %c0_i32_12 = arith.constant 0 : i32
        %16 = arith.cmpi ne, %15, %c0_i32_12 : i32
        %c0_i32_13 = arith.constant 0 : i32
        %17 = arith.cmpi slt, %15, %c0_i32_13 : i32
        %c0_i32_14 = arith.constant 0 : i32
        %18 = arith.cmpi slt, %14, %c0_i32_14 : i32
        %19 = arith.xori %17, %18 : i1
        %20 = arith.andi %19, %16 : i1
        %21 = arith.addi %15, %14 : i32
        %22 = arith.select %20, %21, %15 : i32
        %c0_i32_15 = arith.constant 0 : i32
        %23 = tpu.memref_slice %arg2[%12, %c0_i32_15] : memref<32x128xf32, #tpu.memory_space<any>> -> memref<1x128xf32, #tpu.memory_space<any>>
        %c0_i32_16 = arith.constant 0 : i32
        %24 = tpu.memref_slice %arg3[%6, %c0_i32_16] : memref<128x128xf32, #tpu.memory_space<vmem>> -> memref<1x128xf32, #tpu.memory_space<vmem>>
        %25 = tpu.memref_slice %arg4[%22] : memref<8x!tpu.dma_semaphore, #tpu.memory_space<semaphore_mem>> -> memref<1x!tpu.dma_semaphore, #tpu.memory_space<semaphore_mem>>
        %26 = tpu.memref_squeeze %25 : memref<1x!tpu.dma_semaphore, #tpu.memory_space<semaphore_mem>> -> memref<!tpu.dma_semaphore, #tpu.memory_space<semaphore_mem>>
        tpu.enqueue_dma source(%23 : memref<1x128xf32, #tpu.memory_space<any>>) target(%24 : memref<1x128xf32, #tpu.memory_space<vmem>>) target_semaphore(%26 : memref<!tpu.dma_semaphore, #tpu.memory_space<semaphore_mem>>)
      } else {
      }
    }
    %c8_i32_1 = arith.constant 8 : i32
    %c0_i32_2 = arith.constant 0 : i32
    %c128_i32_3 = arith.constant 128 : i32
    %4 = arith.addi %c0_i32_2, %c128_i32_3 : i32
    %c1_i32_4 = arith.constant 1 : i32
    scf.for %arg5 = %c0_i32_2 to %4 step %c1_i32_4  : i32 {
      %c1_i32_6 = arith.constant 1 : i32
      %5 = arith.muli %arg5, %c1_i32_6 : i32
      %c0_i32_7 = arith.constant 0 : i32
      %6 = arith.addi %c0_i32_7, %5 : i32
      %7 = arith.cmpi slt, %6, %2 : i32
      %8 = arith.extui %7 : i1 to i32
      %c0_i32_8 = arith.constant 0 : i32
      %9 = arith.cmpi ne, %8, %c0_i32_8 : i32
      scf.if %9 {
        %c8_i32_11 = arith.constant 8 : i32
        %c0_i32_12 = arith.constant 0 : i32
        %14 = arith.cmpi eq, %c8_i32_11, %c0_i32_12 : i32
        %c1_i32_13 = arith.constant 1 : i32
        %15 = arith.select %14, %c1_i32_13, %c8_i32_11 : i32
        %16 = arith.remsi %6, %15 : i32
        %c0_i32_14 = arith.constant 0 : i32
        %17 = arith.cmpi ne, %16, %c0_i32_14 : i32
        %c0_i32_15 = arith.constant 0 : i32
        %18 = arith.cmpi slt, %16, %c0_i32_15 : i32
        %c0_i32_16 = arith.constant 0 : i32
        %19 = arith.cmpi slt, %15, %c0_i32_16 : i32
        %20 = arith.xori %18, %19 : i1
        %21 = arith.andi %20, %17 : i1
        %22 = arith.addi %16, %15 : i32
        %23 = arith.select %21, %22, %16 : i32
        %c0_i32_17 = arith.constant 0 : i32
        %c0_i32_18 = arith.constant 0 : i32
        %24 = tpu.memref_slice %arg2[%c0_i32_17, %c0_i32_18] : memref<32x128xf32, #tpu.memory_space<any>> -> memref<1x128xf32, #tpu.memory_space<any>>
        %c0_i32_19 = arith.constant 0 : i32
        %25 = tpu.memref_slice %arg3[%6, %c0_i32_19] : memref<128x128xf32, #tpu.memory_space<vmem>> -> memref<1x128xf32, #tpu.memory_space<vmem>>
        %26 = tpu.memref_slice %arg4[%23] : memref<8x!tpu.dma_semaphore, #tpu.memory_space<semaphore_mem>> -> memref<1x!tpu.dma_semaphore, #tpu.memory_space<semaphore_mem>>
        %27 = tpu.memref_squeeze %26 : memref<1x!tpu.dma_semaphore, #tpu.memory_space<semaphore_mem>> -> memref<!tpu.dma_semaphore, #tpu.memory_space<semaphore_mem>>
        tpu.wait_dma2 semaphore(%27 : memref<!tpu.dma_semaphore, #tpu.memory_space<semaphore_mem>>) src(%24 : memref<1x128xf32, #tpu.memory_space<any>>) dst(%25 : memref<1x128xf32, #tpu.memory_space<vmem>>)
      } else {
      }
      %c8_i32_9 = arith.constant 8 : i32
      %10 = arith.addi %6, %c8_i32_9 : i32
      %11 = arith.cmpi slt, %10, %2 : i32
      %12 = arith.extui %11 : i1 to i32
      %c0_i32_10 = arith.constant 0 : i32
      %13 = arith.cmpi ne, %12, %c0_i32_10 : i32
      scf.if %13 {
        %c8_i32_11 = arith.constant 8 : i32
        %14 = arith.addi %6, %c8_i32_11 : i32
        %15 = arith.addi %0, %14 : i32
        %16 = arith.index_cast %15 : i32 to index
        %17 = memref.load %arg1[%16] : memref<16xi32, #tpu.memory_space<smem>>
        %c8_i32_12 = arith.constant 8 : i32
        %c0_i32_13 = arith.constant 0 : i32
        %18 = arith.cmpi eq, %c8_i32_12, %c0_i32_13 : i32
        %c1_i32_14 = arith.constant 1 : i32
        %19 = arith.select %18, %c1_i32_14, %c8_i32_12 : i32
        %20 = arith.remsi %14, %19 : i32
        %c0_i32_15 = arith.constant 0 : i32
        %21 = arith.cmpi ne, %20, %c0_i32_15 : i32
        %c0_i32_16 = arith.constant 0 : i32
        %22 = arith.cmpi slt, %20, %c0_i32_16 : i32
        %c0_i32_17 = arith.constant 0 : i32
        %23 = arith.cmpi slt, %19, %c0_i32_17 : i32
        %24 = arith.xori %22, %23 : i1
        %25 = arith.andi %24, %21 : i1
        %26 = arith.addi %20, %19 : i32
        %27 = arith.select %25, %26, %20 : i32
        %c0_i32_18 = arith.constant 0 : i32
        %28 = tpu.memref_slice %arg2[%17, %c0_i32_18] : memref<32x128xf32, #tpu.memory_space<any>> -> memref<1x128xf32, #tpu.memory_space<any>>
        %c0_i32_19 = arith.constant 0 : i32
        %29 = tpu.memref_slice %arg3[%14, %c0_i32_19] : memref<128x128xf32, #tpu.memory_space<vmem>> -> memref<1x128xf32, #tpu.memory_space<vmem>>
        %30 = tpu.memref_slice %arg4[%27] : memref<8x!tpu.dma_semaphore, #tpu.memory_space<semaphore_mem>> -> memref<1x!tpu.dma_semaphore, #tpu.memory_space<semaphore_mem>>
        %31 = tpu.memref_squeeze %30 : memref<1x!tpu.dma_semaphore, #tpu.memory_space<semaphore_mem>> -> memref<!tpu.dma_semaphore, #tpu.memory_space<semaphore_mem>>
        tpu.enqueue_dma source(%28 : memref<1x128xf32, #tpu.memory_space<any>>) target(%29 : memref<1x128xf32, #tpu.memory_space<vmem>>) target_semaphore(%31 : memref<!tpu.dma_semaphore, #tpu.memory_space<semaphore_mem>>)
      } else {
      }
    }
    %c128_i32_5 = arith.constant 128 : i32
    return
  }
  func.func @transform_1(%arg0: i32, %arg1: memref<16xi32, #tpu.memory_space<smem>>) -> (i32, i32) {
    %c0_i32 = arith.constant 0 : i32
    %c0_i32_0 = arith.constant 0 : i32
    return %arg0, %c0_i32 : i32, i32
  }
}

</mosaic_0001>

<bundles_post_ra>
// kernel: tpu_custom_call.1
= control target key start
LH: loop header
LB: loop body
LE: loop exit
PB: predicated region body
PF: predicated region fallthrough
CT: control target
= control target key end

     0   :  { %s519_s0 = inlined_call_operand.hbm [shape: s32[16], index: 0, kind: input, shape index: {}]   ;;  %s520_s1 = inlined_call_operand.hbm [shape: f32[32,128], index: 1, kind: input, shape index: {}]   ;;  %s521_s2 = inlined_call_operand.hbm [shape: f32[128,128], index: 2, kind: output, shape index: {}]  }
   0x1   :  { %s261_s11 = scalar_lea.hbm %s519_s0, 16 }
   0x2   :  { %p262_p0 = scmp.ne.s32.totalorder %s519_s0, %s261_s11  ;;  %p265_p1 = scmp.lt.u32.totalorder %s261_s11, %s519_s0 }
   0x4   :  { %p267_p2 = pnand %p265_p1, %p262_p0 }
   0x6   :  { %270 = shalt.err (!%p267_p2)  }
   0x7   :  { %s373_s16 = smov [#allocation4]  }
   0x8   :  { %8 = dma.hbm_to_smem %s519_s0, 16, %s373_s16, [#allocation3] }
   0x9   :  { %357 = dma.done.wait [#allocation3], 16 }
   0xa   :  { %358 = vsyncadd [#allocation3], 4294967280 }
   0xb   :  { %10 = sfence }
   0xc   :  { %11 = vsyncpa [#allocation6], 0  ;;  %s404_s19 = smov 0  }
   0xd LB: > { %p238_p3 = scmp.lt.s32.totalorder %s367_s19, 16  ;;  %p28_p4 = scmp.lt.s32.totalorder %s367_s19, 0  ;;  %s367_s19 = sphi %s404_s19, %s21_s19  }
   0xe   : > { %s29_s0 = ssub.s32 0, %s367_s19  ;;  %s42_s26 = scalar_lea.vmem [#allocation5], %s367_s19 }
   0xf   : > { %s229_s20 = scalar_select %p238_p3, [#allocation4], [#allocation13] }
  0x10   : > { %s230_s21 = scalar_select %p238_p3, %s367_s19, 0 }
  0x11   : > { %s207_s22 = smin.u32 %s367_s19, %s29_s0  ;;  %s51_s27 = sshll.u32 %s42_s26, 4  ;;  %s419_s27 = int_to_ptr.vmem [resolvable:$true] %s51_s27 }
  0x12   : > { %s27_s23 = sld [smem:[%s229_s20 + %s230_s21]]  ;;  %s31_s24 = sand.u32 7, %s207_s22  }
  0x13   : > { %s32_s25 = ssub.s32 0, %s31_s24  ;;  %s275_s9 = scalar_lea.hbm %s520_s1, 512 }
  0x14   : > { %s523_s25 = smov (!%p28_p4, %s32_s25), %s31_s24 }
  0x15   : > { %p209_p5 = scmp.lt.s32.totalorder %s523_s25, 0  ;;  %s38_s28 = sadd.s32 8, %s523_s25 }
  0x17   : > { %s525_s28 = smov (!%p209_p5, %s38_s28), %s523_s25 }
  0x18   : > { %s210_s29 = sshll.u32 %s27_s23, 4  ;;  %s43_s5 = scalar_lea.sflag [#allocation2], %s525_s28 }
  0x19   : > { %s41_s4 = scalar_lea.hbm %s520_s1, %s210_s29 }
  0x1a   : > { %s271_s6 = scalar_lea.hbm %s41_s4, 16  ;;  %p276_p9 = scmp.lt.u32.totalorder %s41_s4, %s520_s1 }
  0x1b   : > { %p272_p6 = scmp.ne.s32.totalorder %s41_s4, %s271_s6  ;;  %p277_p10 = scmp.lt.u32.totalorder %s275_s9, %s271_s6 }
  0x1c   : > { %p279_p12 = scmp.lt.u32.totalorder %s271_s6, %s41_s4 }
  0x1d   : > { %p273_p7 = pnand %p272_p6, %p238_p3  ;;  %p278_p11 = por %p277_p10, %p276_p9 }
  0x1f   : > { %p274_p8 = pneg %p273_p7  ;;  %p280_p13 = por %p279_p12, %p278_p11 }
  0x21   : > { %p281_p0 = pnand %p280_p13, %p274_p8 }
  0x23   : > { %284 = shalt.err (!%p281_p0)  }
  0x24   : > { %s285_s14 = scalar_lea.vmem %s419_s27, 16  ;;  %s374_s15 = smov [#allocation5]  }
  0x25   : > { %p286_p1 = scmp.ne.s32.totalorder %s419_s27, %s285_s14  ;;  %s289_s16 = sshll.u32 %s374_s15, 4  ;;  %s443_s16 = int_to_ptr.vmem [resolvable:$false] %s289_s16 }
  0x26   : > { %s446_s17 = scalar_lea.vmem %s443_s16, 2048  ;;  %p292_p5 = scmp.lt.s32.totalorder %s419_s27, %s443_s16 }
  0x27   : > { %p287_p2 = pnand %p286_p1, %p238_p3  ;;  %p293_p6 = scmp.lt.s32.totalorder %s446_s17, %s285_s14 }
  0x29   : > { %p288_p4 = pneg %p287_p2  ;;  %p294_p7 = por %p293_p6, %p292_p5 }
  0x2b   : > { %p295_p8 = pnand %p294_p7, %p288_p4 }
  0x2d   : > { %298 = shalt.err (!%p295_p8)  }
  0x2e   : > { %231 = dma.hbm_to_vmem [thread:$0]  (%p238_p3), %s41_s4, 16, %s419_s27, %s43_s5 }
  0x2f   : > { %s21_s19 = sadd.s32 1, %s367_s19  }
  0x30   : > { %p18_p9 = scmp.ge.s32.totalorder %s21_s19, 8  }
  0x31   :  { %s457_s18 = smov (%p18_p9), 0  }
  0x32   :  { %20 = sbr.rel (!%p18_p9) target bundleno = 13 (0xd), region = 68 }
  0x39 LB: > { %p239_p10 = scmp.lt.s32.totalorder %s371_s18, 16  ;;  %p65_p11 = scmp.lt.s32.totalorder %s371_s18, 0  ;;  %s371_s18 = sphi %s457_s18, %s60_s18  }
  0x3a   : > { %s66_s0 = ssub.s32 0, %s371_s18 }
  0x3b   : > { %s212_s20 = smin.u32 %s371_s18, %s66_s0 }
  0x3c   : > { %s68_s21 = sand.u32 7, %s212_s20  }
  0x3d   : > { %s69_s22 = ssub.s32 0, %s68_s21 }
  0x3e   : > { %s527_s22 = smov (!%p65_p11, %s69_s22), %s68_s21 }
  0x3f   : > { %p214_p3 = scmp.lt.s32.totalorder %s527_s22, 0  ;;  %s75_s19 = sadd.s32 8, %s527_s22 }
  0x41   : > { %s529_s19 = smov (!%p214_p3, %s75_s19), %s527_s22 }
  0x42   : > { %s77_s23 = scalar_lea.sflag [#allocation2], %s529_s19 }
  0x43   : > { %360 = dma.done.wait (%p239_p10), %s77_s23, 16 }
  0x44   : > { %362 = vsyncadd (%p239_p10), %s77_s23, 4294967280  ;;  %s467_s24 = sadd.s32 8, %s371_s18  ;;  %s193_s4 = scalar_lea.vmem [#allocation5], %s371_s18 }
  0x45   : > { %p240_p12 = scmp.lt.s32.totalorder %s467_s24, 16  ;;  %p88_p13 = scmp.lt.s32.totalorder %s467_s24, 0 }
  0x46   : > { %s89_s25 = ssub.s32 0, %s467_s24  ;;  %s194_s5 = scalar_lea.vmem %s193_s4, 8 [#allocation5] }
  0x47   : > { %s235_s26 = scalar_select %p240_p12, [#allocation4], [#allocation14] }
  0x48   : > { %s236_s27 = scalar_select %p240_p12, %s467_s24, 0 }
  0x49   : > { %s216_s28 = smin.u32 %s89_s25, %s467_s24  ;;  %s111_s6 = sshll.u32 %s194_s5, 4  ;;  %s112_s6 = int_to_ptr.vmem [resolvable:$true] %s111_s6 }
  0x4a   : > { %s87_s29 = sld [smem:[%s235_s26 + %s236_s27]]  ;;  %s91_s30 = sand.u32 7, %s216_s28  }
  0x4b   : > { %s92_s3 = ssub.s32 0, %s91_s30 }
  0x4c   : > { %s531_s3 = smov (!%p88_p13, %s92_s3), %s91_s30 }
  0x4d   : > { %p218_p0 = scmp.lt.s32.totalorder %s531_s3, 0  ;;  %s98_s7 = sadd.s32 8, %s531_s3 }
  0x4f   : > { %s533_s7 = smov (!%p218_p0, %s98_s7), %s531_s3 }
  0x50   : > { %s219_s8 = sshll.u32 %s87_s29, 4  ;;  %s103_s13 = scalar_lea.sflag [#allocation2], %s533_s7 }
  0x51   : > { %s101_s12 = scalar_lea.hbm %s520_s1, %s219_s8 }
  0x52   : > { %s299_s14 = scalar_lea.hbm %s101_s12, 16  ;;  %p304_p5 = scmp.lt.u32.totalorder %s101_s12, %s520_s1 }
  0x53   : > { %p300_p1 = scmp.ne.s32.totalorder %s101_s12, %s299_s14  ;;  %p305_p6 = scmp.lt.u32.totalorder %s275_s9, %s299_s14 }
  0x54   : > { %p307_p8 = scmp.lt.u32.totalorder %s299_s14, %s101_s12 }
  0x55   : > { %p301_p2 = pnand %p300_p1, %p240_p12  ;;  %p306_p7 = por %p305_p6, %p304_p5 }
  0x57   : > { %p302_p4 = pneg %p301_p2  ;;  %p308_p9 = por %p307_p8, %p306_p7 }
  0x59   : > { %p309_p10 = pnand %p308_p9, %p302_p4 }
  0x5b   : > { %312 = shalt.err (!%p309_p10)  }
  0x5c   : > { %s313_s22 = scalar_lea.vmem %s112_s6, 16  ;;  %p320_p0 = scmp.lt.s32.totalorder %s112_s6, %s443_s16 }
  0x5d   : > { %p314_p11 = scmp.ne.s32.totalorder %s112_s6, %s313_s22  ;;  %p321_p1 = scmp.lt.s32.totalorder %s446_s17, %s313_s22 }
  0x5f   : > { %p315_p3 = pnand %p314_p11, %p240_p12  ;;  %p322_p2 = por %p321_p1, %p320_p0 }
  0x61   : > { %p316_p13 = pneg %p315_p3 }
  0x63   : > { %p323_p5 = pnand %p322_p2, %p316_p13 }
  0x65   : > { %326 = shalt.err (!%p323_p5)  }
  0x66   : > { %237 = dma.hbm_to_vmem [thread:$0]  (%p240_p12), %s101_s12, 16, %s112_s6, %s103_s13 }
  0x67   : > { %s60_s18 = sadd.s32 1, %s371_s18  }
  0x68   : > { %p57_p4 = scmp.ge.s32.totalorder %s60_s18, 128  }
  0x69   :  { %p328_p6 = scmp.ne.s32.totalorder (%p57_p4), %s443_s16, %s446_s17  ;;  %p332_p7 = scmp.lt.s32.totalorder (%p57_p4), %s443_s16, %s443_s16 }
  0x6a   :  { %59 = sbr.rel (!%p57_p4) target bundleno = 57 (0x39), region = 79  ;;  %p333_p8 = scmp.lt.s32.totalorder (%p57_p4), %s446_s17, %s446_s17 }
  0x6c   :  { %p334_p9 = por (%p57_p4), %p333_p8, %p332_p7 }
  0x6e   :  { %p335_p10 = pnand (%p57_p4), %p334_p9, %p328_p6 }
  0x71   :  { %338 = shalt.err (!%p335_p10)
}
  0x72   :  { %s339_s24 = scalar_lea.hbm %s521_s2, 2048 }
  0x73   :  { %p340_p12 = scmp.ne.s32.totalorder %s521_s2, %s339_s24  ;;  %p343_p11 = scmp.lt.u32.totalorder %s339_s24, %s521_s2 }
  0x75   :  { %p345_p3 = pnand %p343_p11, %p340_p12 }
  0x77   :  { %348 = shalt.err (!%p345_p3)
}
  0x78   :  { %s375_s18 = smov 128   ;;  %s376_s17 = smov 8  }
  0x79   :  { %126 = dma.vmem_to_hbm [thread:$0]  %s443_s16, 2048, %s521_s2, [#allocation6], %s375_s18, %s375_s18, %s376_s17  }
  0x7a   :  { %363 = dma.done.wait [#allocation6], 2048  }
  0x7b   :  { %364 = vsyncadd [#allocation6], 4294965248 }
  0x7c   :  { %130 = vsyncpa [#allocation6], 1 }
  0x7d   :  { %131 = vsyncmov [#allocation2] }
  0x80   :  { %s132_s29 = vpop.sfrf %131 }
  0x81   :  { %p220_p13 = scmp.ne.s32.totalorder %s132_s29, 0 }
  0x83   :  { %136 = shalt.err (%p220_p13)  }
  0x84   :  { %138 = vsyncmov [#allocation2 + $0x1] }
  0x87   :  { %s139_s30 = vpop.sfrf %138 }
  0x88   :  { %p221_p0 = scmp.ne.s32.totalorder %s139_s30, 0 }
  0x8a   :  { %143 = shalt.err (%p221_p0)  }
  0x8b   :  { %145 = vsyncmov [#allocation2 + $0x2] }
  0x8e   :  { %s146_s3 = vpop.sfrf %145 }
  0x8f   :  { %p222_p1 = scmp.ne.s32.totalorder %s146_s3, 0 }
  0x91   :  { %150 = shalt.err (%p222_p1)  }
  0x92   :  { %152 = vsyncmov [#allocation2 + $0x3] }
  0x95   :  { %s153_s4 = vpop.sfrf %152 }
  0x96   :  { %p223_p2 = scmp.ne.s32.totalorder %s153_s4, 0 }
  0x98   :  { %157 = shalt.err (%p223_p2)  }
  0x99   :  { %159 = vsyncmov [#allocation2 + $0x4] }
  0x9c   :  { %s160_s2 = vpop.sfrf %159 }
  0x9d   :  { %p224_p5 = scmp.ne.s32.totalorder %s160_s2, 0 }
  0x9f   :  { %164 = shalt.err (%p224_p5)  }
  0xa0   :  { %166 = vsyncmov [#allocation2 + $0x5] }
  0xa3   :  { %s167_s16 = vpop.sfrf %166 }
  0xa4   :  { %p225_p4 = scmp.ne.s32.totalorder %s167_s16, 0 }
  0xa6   :  { %171 = shalt.err (%p225_p4)  }
  0xa7   :  { %173 = vsyncmov [#allocation2 + $0x6] }
  0xaa   :  { %s174_s5 = vpop.sfrf %173 }
  0xab   :  { %p226_p6 = scmp.ne.s32.totalorder %s174_s5, 0 }
  0xad   :  { %178 = shalt.err (%p226_p6)  }
  0xae   :  { %180 = vsyncmov [#allocation2 + $0x7] }
  0xb1   :  { %s181_s6 = vpop.sfrf %180 }
  0xb2   :  { %p227_p7 = scmp.ne.s32.totalorder %s181_s6, 0 }
  0xb4   :  { %185 = shalt.err (%p227_p7)  }

</bundles_post_ra>
